<compile_context>
chip_gen: v7x
topology: tpu7x:2x2x1
jax: 0.10.0
libtpu: 0.0.40
codegen_flags: <defaults>
</compile_context>

<pallas_src>
import jax
import jax.numpy as jnp
import numpy as np
from jax import lax
from jax.experimental import pallas as pl
from jax.experimental.pallas import tpu as pltpu


# ---------------------------------------------------------------------------
# Pallas kernel.
# grid = (nb,): one step per distinct lag block kk (reduction axis).
#   x_ref : (rows, T_pad)      -- fully resident input (constant block index)
#   d_ref : (1, TILE, TILE)    -- Toeplitz block for lag offset kk (streamed)
#   o_ref : (rows, T_pad) f32  -- resident accumulator, written back once
# Each step adds x[:, (j-kk)*TILE : +TILE] @ D[kk] into y[:, j*TILE : +TILE]
# for every output block j >= kk.
# ---------------------------------------------------------------------------
def _reverb_conv_kernel(x_ref, d_ref, o_ref):
    kk = pl.program_id(0)
    tile = d_ref.shape[-1]
    nj = o_ref.shape[-1] // tile

    @pl.when(kk == 0)
    def _init():
        o_ref[...] = jnp.zeros_like(o_ref)

    r_blk = d_ref[0]  # (TILE, TILE), rir lag block kk

    def body(j, carry):
        src = pl.multiple_of((j - kk) * tile, tile)
        dst = pl.multiple_of(j * tile, tile)
        x_blk = x_ref[:, pl.ds(src, tile)]
        o_ref[:, pl.ds(dst, tile)] += jnp.dot(
            x_blk, r_blk, preferred_element_type=jnp.float32
        )
        return carry

    # Only output blocks j >= kk receive a contribution from lag block kk.
    lax.fori_loop(kk, nj, body, 0)


# ---------------------------------------------------------------------------
# Plain-JAX glue (all traceable / jit-able).
# ---------------------------------------------------------------------------
def preprocess_rir(rir_raw, timesteps, offset=20):
    """Traceable equivalent of the torch windowing + pad-to-T + L2 norm."""
    flat = rir_raw.reshape(-1).astype(jnp.float32)
    peak = jnp.argmax(jnp.abs(flat))
    start = jnp.maximum(peak - offset, 0)
    # rir_raw[start : min(L, start + timesteps)], zero-padded to `timesteps`.
    padded = jnp.concatenate([flat, jnp.zeros((timesteps,), jnp.float32)])
    seg = lax.dynamic_slice(padded, (start,), (timesteps,))
    return seg / (jnp.linalg.norm(seg) + 1e-6)


def _build_lag_blocks(rir_padded, tile, nb):
    """D[kk, r, c] = rir_padded[kk*tile + c - r] (0 where the lag is negative).

    These are the only distinct (tile, tile) blocks of the lower-triangular
    Toeplitz convolution operator; O(nb * tile^2) elements instead of O(T^2).
    """
    kk = jnp.arange(nb, dtype=jnp.int32)[:, None, None]
    r = jnp.arange(tile, dtype=jnp.int32)[None, :, None]
    c = jnp.arange(tile, dtype=jnp.int32)[None, None, :]
    d = kk * tile + c - r
    n = rir_padded.shape[0]
    vals = rir_padded[jnp.clip(d, 0, n - 1)]
    return jnp.where((d >= 0) & (d < n), vals, 0.0)


def causal_reverb_matmul(x, rir, rir_raw_len, *, tile=256,
                         compute_dtype=jnp.float32):
    """y[b, t] = sum_k x[b, k] * rir[t - k] (causal), via a Pallas TPU kernel.

    x: (rows, T) float32; rir: (T,) float32 (zero beyond its support).
    rir_raw_len: static length of the raw RIR (upper bound on the support).
    compute_dtype: jnp.bfloat16 trades a little precision for MXU throughput
    on v6e/v7x; accumulation is always float32.
    """
    rows, T = x.shape
    nj = pl.cdiv(T, tile)
    T_pad = nj * tile
    support = min(int(rir_raw_len), T)           # static bound on rir support
    nb = min(pl.cdiv(support, tile) + 1, nj)     # lag blocks that can contribute

    x_p = jnp.pad(x.astype(jnp.float32), ((0, 0), (0, T_pad - T)))
    rir_p = jnp.pad(rir.astype(jnp.float32), (0, T_pad - T))
    lag_blocks = _build_lag_blocks(rir_p, tile, nb)        # (nb, tile, tile)

    x_p = x_p.astype(compute_dtype)
    lag_blocks = lag_blocks.astype(compute_dtype)

    # VMEM budget: resident x + resident f32 accumulator + double-buffered
    # (tile, tile) lag block.  Cap at 64 MiB so the choice is v7x-safe.
    itemsize = np.dtype(compute_dtype).itemsize
    vmem_need = (2 * rows * T_pad * 4                      # output (dbl-buf)
                 + 2 * rows * T_pad * itemsize             # x (dbl-buf)
                 + 2 * tile * tile * itemsize)             # lag block (dbl-buf)
    vmem_limit = int(min(max(2 * vmem_need, 32 * 1024 * 1024), 64 * 1024 * 1024))

    y_p = pl.pallas_call(
        _reverb_conv_kernel,
        out_shape=jax.ShapeDtypeStruct((rows, T_pad), jnp.float32),
        grid_spec=pltpu.PrefetchScalarGridSpec(
            num_scalar_prefetch=0,
            grid=(nb,),
            in_specs=[
                pl.BlockSpec((rows, T_pad), lambda kk: (0, 0)),        # x resident
                pl.BlockSpec((1, tile, tile), lambda kk: (kk, 0, 0)),  # lag block kk
            ],
            out_specs=pl.BlockSpec((rows, T_pad), lambda kk: (0, 0)),  # y resident
        ),
        compiler_params=pltpu.CompilerParams(
            dimension_semantics=("arbitrary",),   # reduction over lag blocks
            vmem_limit_bytes=vmem_limit,
        ),
    )(x_p, lag_blocks)
    return y_p[:, :T]


def convolution_reverb_forward(waveform, rir_raw, *, tile=256,
                               compute_dtype=jnp.float32):
    """waveform: (B, C, T), rir_raw: (1, 1, L) -> (B, C, T)."""
    B, C, T = waveform.shape
    rir = preprocess_rir(rir_raw, T)
    x = waveform.reshape(B * C, T).astype(jnp.float32)   # fold batch*channels
    y = causal_reverb_matmul(x, rir, rir_raw.shape[-1],
                             tile=tile, compute_dtype=compute_dtype)
    return y.reshape(B, C, T)


if __name__ == "__main__":
    key = jax.random.PRNGKey(0)
    k_wave, k_rir = jax.random.split(key)

    # Small but representative: batch folded into MXU rows, T not a multiple of
    # the 256 tile (exercises padding), RIR shorter than the clip (exercises
    # the banded contraction).
    B, C, T = 8, 1, 2000
    waveform = jax.random.normal(k_wave, (B, C, T), dtype=jnp.float32)

    # Deterministic synthetic "RIR dataset" sample: decaying noise tail with a
    # clear direct-path peak (exercises the argmax/offset windowing).
    L, peak_idx = 700, 60
    t_ax = jnp.arange(L, dtype=jnp.float32)
    env = jnp.exp(-0.01 * jnp.maximum(t_ax - peak_idx, 0.0)) * (t_ax >= peak_idx)
    rir_raw = jax.random.normal(k_rir, (L,), dtype=jnp.float32) * env * 0.2
    rir_raw = rir_raw.at[peak_idx].set(1.5).reshape(1, 1, L)

    fwd = jax.jit(convolution_reverb_forward)   # whole forward is traceable now
    y = fwd(waveform, rir_raw)
    jax.block_until_ready(y)

    # Pure-JAX reference of the same windowing + causal convolution.
    rir = preprocess_rir(rir_raw, T)
    kk = jnp.arange(T)[:, None]
    tt = jnp.arange(T)[None, :]
    d = tt - kk
    R = jnp.where(d >= 0, rir[jnp.clip(d, 0, T - 1)], 0.0)
    y_ref = jnp.dot(
        waveform.reshape(B * C, T), R, precision=jax.lax.Precision.HIGHEST
    ).reshape(B, C, T)

    assert y.shape == (B, C, T)
    err = float(jnp.max(jnp.abs(y - y_ref)))
    assert jnp.allclose(y, y_ref, atol=2e-3, rtol=2e-3), f"mismatch, max err {err}"

    print("KERNEL_OK")
</pallas_src>

<mosaic_0001>
module attributes {stable_mosaic.version = 11 : i64} {
  func.func @_reverb_conv_kernel(%arg0: i32, %arg1: memref<8x2048xf32, #tpu.memory_space<vmem>>, %arg2: memref<1x256x256xf32, #tpu.memory_space<vmem>>, %arg3: memref<8x2048xf32, #tpu.memory_space<vmem>>) attributes {dimension_semantics = [#tpu.dimension_semantics<arbitrary>], iteration_bounds = array<i64: 4>, scalar_prefetch = 0 : i64, scratch_operands = 0 : i64, tpu.core_type = #tpu.core_type<tc>, window_params = [{pipeline_mode = #tpu.pipeline_mode<synchronous>, transform_indices = @transform_0, window_bounds = array<i64: 8, 2048>}, {transform_indices = @transform_1, window_bounds = array<i64: 1, 256, 256>}, {pipeline_mode = #tpu.pipeline_mode<synchronous>, transform_indices = @transform_2, window_bounds = array<i64: 8, 2048>}]} {
    %c0_i32 = arith.constant 0 : i32
    %0 = arith.cmpi eq, %arg0, %c0_i32 : i32
    %1 = arith.extui %0 : i1 to i32
    %c0_i32_0 = arith.constant 0 : i32
    %2 = arith.cmpi ne, %1, %c0_i32_0 : i32
    scf.if %2 {
      %cst = arith.constant 0.000000e+00 : f32
      %7 = vector.broadcast %cst : f32 to vector<8x2048xf32>
      %c0_4 = arith.constant 0 : index
      %c0_5 = arith.constant 0 : index
      %8 = vector.load %arg3[%c0_4, %c0_5] : memref<8x2048xf32, #tpu.memory_space<vmem>>, vector<8x2048xf32>
      tpu.vector_store %arg3[%c0_4, %c0_5], %7 {strides = array<i32>} : memref<8x2048xf32, #tpu.memory_space<vmem>>, vector<8x2048xf32>,
    } else {
    }
    %c0 = arith.constant 0 : index
    %c0_1 = arith.constant 0 : index
    %c0_2 = arith.constant 0 : index
    %3 = vector.load %arg2[%c0, %c0_1, %c0_2] : memref<1x256x256xf32, #tpu.memory_space<vmem>>, vector<1x256x256xf32>
    %4 = vector.shape_cast %3 : vector<1x256x256xf32> to vector<256x256xf32>
    %c0_i32_3 = arith.constant 0 : i32
    %c8_i32 = arith.constant 8 : i32
    %5 = arith.subi %c8_i32, %arg0 : i32
    %6 = arith.addi %arg0, %5 : i32
    %c1_i32 = arith.constant 1 : i32
    scf.for %arg4 = %arg0 to %6 step %c1_i32  : i32 {
      %7 = arith.subi %arg4, %arg0 : i32
      %c256_i32 = arith.constant 256 : i32
      %8 = arith.muli %7, %c256_i32 : i32
      %9 = tpu.assume_multiple %8, 256 : i32
      %c256_i32_4 = arith.constant 256 : i32
      %10 = arith.muli %arg4, %c256_i32_4 : i32
      %11 = tpu.assume_multiple %10, 256 : i32
      %c0_5 = arith.constant 0 : index
      %12 = arith.index_cast %9 : i32 to index
      %13 = vector.load %arg1[%c0_5, %12] : memref<8x2048xf32, #tpu.memory_space<vmem>>, vector<8x256xf32>
      %c0_6 = arith.constant 0 : index
      %14 = arith.index_cast %11 : i32 to index
      %15 = vector.load %arg3[%c0_6, %14] : memref<8x2048xf32, #tpu.memory_space<vmem>>, vector<8x256xf32>
      %cst = arith.constant dense<0.000000e+00> : vector<8x256xf32>
      %16 = tpu.matmul %13, %4, %cst {dimension_numbers = #tpu.dot_dimension_numbers<[1], [0], [0], [1], [0, 0, 1, 1], [], []>} : vector<8x256xf32>, vector<256x256xf32>, vector<8x256xf32> -> vector<8x256xf32>
      %17 = arith.addf %15, %16 : vector<8x256xf32>
      %c0_7 = arith.constant 0 : index
      %18 = arith.index_cast %11 : i32 to index
      %19 = vector.load %arg3[%c0_7, %18] : memref<8x2048xf32, #tpu.memory_space<vmem>>, vector<8x256xf32>
      tpu.vector_store %arg3[%c0_7, %18], %17 {strides = array<i32>} : memref<8x2048xf32, #tpu.memory_space<vmem>>, vector<8x256xf32>,
    }
    return
  }
  func.func @transform_0(%arg0: i32) -> (i32, i32) {
    %c0_i32 = arith.constant 0 : i32
    %c0_i32_0 = arith.constant 0 : i32
    %c0_i32_1 = arith.constant 0 : i32
    return %c0_i32, %c0_i32_0 : i32, i32
  }
  func.func @transform_1(%arg0: i32) -> (i32, i32, i32) {
    %c0_i32 = arith.constant 0 : i32
    %c0_i32_0 = arith.constant 0 : i32
    %c0_i32_1 = arith.constant 0 : i32
    return %arg0, %c0_i32, %c0_i32_0 : i32, i32, i32
  }
  func.func @transform_2(%arg0: i32) -> (i32, i32) {
    %c0_i32 = arith.constant 0 : i32
    %c0_i32_0 = arith.constant 0 : i32
    %c0_i32_1 = arith.constant 0 : i32
    return %c0_i32, %c0_i32_0 : i32, i32
  }
}

</mosaic_0001>

<bundles_post_ra>
// kernel: convolution_reverb_forward.1
= control target key start
LH: loop header
LB: loop body
LE: loop exit
PB: predicated region body
PF: predicated region fallthrough
CT: control target
= control target key end

     0   :  { %s473_s9 = smov 0   ;;  %s821_s0 = inlined_call_operand.vmem [shape: f32[8,2048], index: 0, kind: input, shape index: {}]   ;;  %s822_s1 = inlined_call_operand.vmem [shape: f32[4,256,256], index: 1, kind: input, shape index: {}]   ;;  %s823_s2 = inlined_call_operand.vmem [shape: f32[8,2048], index: 2, kind: output, shape index: {}]  }
   0x1 LB: > { %s479_s10 = sadd.s32 4294967295, %s451_s9   ;;  %p349_p0 = scmp.ge.s32.totalorder %s451_s9, 1  ;;  %s451_s9 = sphi %s473_s9, %s12_s9  }
   0x2   : > { %p107_p1 = scmp.lt.s32.totalorder %s451_s9, 5 }
   0x4   : > { %p108_p2 = pnand %p349_p0, %p107_p1 }
   0x6   : > { %111 = sbr.rel (%p108_p2) target bundleno = 331 (0x14b), region = 28 }
   0xd   : > { %p124_p3 = scmp.lt.s32.totalorder %s479_s10, 3  ;;  %p352_p4 = scmp.ne.s32.totalorder %s479_s10, 0 }
   0xe   : > { %v457_v0 = vmov (!%p352_p4), 0.0  }
   0xf   : > { %s125_s11 = scalar_select %p124_p3, %s479_s10, 3 }
  0x10   : > { %132 = sbr.rel (%p352_p4) target bundleno = 24 (0x18), region = 32  ;;  %133 = vst [vmem:[%s823_s2] sm:$0xff] (!%p352_p4), %v457_v0  ;;  %134 = vst [vmem:[%s823_s2 + $0x8] sm:$0xff] (!%p352_p4), %v457_v0 }
  0x11   : > { %s359_s12 = sshll.u32 %s125_s11, 9  ;;  %135 = vst [vmem:[%s823_s2 + $0x10] sm:$0xff] (!%p352_p4), %v457_v0  ;;  %136 = vst [vmem:[%s823_s2 + $0x18] sm:$0xff] (!%p352_p4), %v457_v0 }
  0x12   : > { %s488_s15 = scalar_lea.vmem %s822_s1, %s359_s12  ;;  %137 = vst [vmem:[%s823_s2 + $0x20] sm:$0xff] (!%p352_p4), %v457_v0  ;;  %138 = vst [vmem:[%s823_s2 + $0x28] sm:$0xff] (!%p352_p4), %v457_v0 }
  0x13   : > { %139 = vst [vmem:[%s823_s2 + $0x30] sm:$0xff] (!%p352_p4), %v457_v0  ;;  %140 = vst [vmem:[%s823_s2 + $0x38] sm:$0xff] (!%p352_p4), %v457_v0 }
  0x14   : > { %141 = vst [vmem:[%s823_s2 + $0x40] sm:$0xff] (!%p352_p4), %v457_v0  ;;  %142 = vst [vmem:[%s823_s2 + $0x48] sm:$0xff] (!%p352_p4), %v457_v0 }
  0x15   : > { %143 = vst [vmem:[%s823_s2 + $0x50] sm:$0xff] (!%p352_p4), %v457_v0  ;;  %144 = vst [vmem:[%s823_s2 + $0x58] sm:$0xff] (!%p352_p4), %v457_v0 }
  0x16   : > { %145 = vst [vmem:[%s823_s2 + $0x60] sm:$0xff] (!%p352_p4), %v457_v0  ;;  %146 = vst [vmem:[%s823_s2 + $0x68] sm:$0xff] (!%p352_p4), %v457_v0 }
  0x17   : > { %147 = vst [vmem:[%s823_s2 + $0x70] sm:$0xff] %v457_v0  ;;  %148 = vst [vmem:[%s823_s2 + $0x78] sm:$0xff] %v457_v0 }
  0x18 PF: > { %v540_v1 = vld [vmem:[%s488_s15] sm:$0xff]  ;;  %v543_v2 = vld [vmem:[%s488_s15 + $0x8] sm:$0xff]  ;;  %v546_v3 = vld [vmem:[%s488_s15 + $0x10] sm:$0xff]  ;;  %p331_p5 = scmp.ge.s32.totalorder %s479_s10, 8 }
  0x19   : > { %824 = vst [vmem:[#allocation2_spill] sm:$0xff] %v540_v1  ;;  %825 = vst [vmem:[#allocation3_spill] sm:$0xff] %v543_v2  ;;  %v549_v4 = vld [vmem:[%s488_s15 + $0x18] sm:$0xff]  ;;  %v552_v5 = vld [vmem:[%s488_s15 + $0x20] sm:$0xff]  ;;  %s836_s23 = smov (!%p331_p5), %s479_s10 }
  0x1a   : > { %826 = vst [vmem:[#allocation4_spill] sm:$0xff] %v546_v3  ;;  %827 = vst [vmem:[#allocation5_spill] sm:$0xff] %v549_v4  ;;  %v555_v6 = vld [vmem:[%s488_s15 + $0x28] sm:$0xff]  ;;  %v558_v7 = vld [vmem:[%s488_s15 + $0x30] sm:$0xff] }
  0x1b   : > { %828 = vst [vmem:[#allocation6_spill] sm:$0xff] %v552_v5  ;;  %829 = vst [vmem:[#allocation7_spill] sm:$0xff] %v555_v6  ;;  %v561_v8 = vld [vmem:[%s488_s15 + $0x38] sm:$0xff]  ;;  %v564_v9 = vld [vmem:[%s488_s15 + $0x40] sm:$0xff] }
  0x1c   : > { %830 = vst [vmem:[#allocation8_spill] sm:$0xff] %v558_v7  ;;  %v567_v10 = vld [vmem:[%s488_s15 + $0x48] sm:$0xff]  ;;  %v570_v11 = vld [vmem:[%s488_s15 + $0x50] sm:$0xff]  ;;  %v573_v12 = vld [vmem:[%s488_s15 + $0x58] sm:$0xff] }
  0x1d   : > { %v576_v13 = vld [vmem:[%s488_s15 + $0x60] sm:$0xff]  ;;  %v579_v14 = vld [vmem:[%s488_s15 + $0x68] sm:$0xff]  ;;  %v582_v15 = vld [vmem:[%s488_s15 + $0x70] sm:$0xff] }
  0x1e   : > { %v585_v16 = vld [vmem:[%s488_s15 + $0x78] sm:$0xff]  ;;  %v588_v17 = vld [vmem:[%s488_s15 + $0x80] sm:$0xff]  ;;  %v591_v18 = vld [vmem:[%s488_s15 + $0x88] sm:$0xff] }
  0x1f   : > { %v594_v19 = vld [vmem:[%s488_s15 + $0x90] sm:$0xff]  ;;  %v597_v20 = vld [vmem:[%s488_s15 + $0x98] sm:$0xff]  ;;  %v600_v21 = vld [vmem:[%s488_s15 + $0xa0] sm:$0xff] }
  0x20   : > { %v603_v22 = vld [vmem:[%s488_s15 + $0xa8] sm:$0xff]  ;;  %v606_v23 = vld [vmem:[%s488_s15 + $0xb0] sm:$0xff]  ;;  %v609_v24 = vld [vmem:[%s488_s15 + $0xb8] sm:$0xff] }
  0x21   : > { %v612_v25 = vld [vmem:[%s488_s15 + $0xc0] sm:$0xff]  ;;  %v615_v26 = vld [vmem:[%s488_s15 + $0xc8] sm:$0xff]  ;;  %v618_v27 = vld [vmem:[%s488_s15 + $0xd0] sm:$0xff] }
  0x22   : > { %v621_v28 = vld [vmem:[%s488_s15 + $0xd8] sm:$0xff]  ;;  %v624_v29 = vld [vmem:[%s488_s15 + $0xe0] sm:$0xff]  ;;  %v627_v30 = vld [vmem:[%s488_s15 + $0xe8] sm:$0xff] }
  0x23   : > { %v630_v31 = vld [vmem:[%s488_s15 + $0xf0] sm:$0xff]  ;;  %v633_v32 = vld [vmem:[%s488_s15 + $0xf8] sm:$0xff]  ;;  %v636_v33 = vld [vmem:[%s488_s15 + $0x100] sm:$0xff] }
  0x24   : > { %v639_v34 = vld [vmem:[%s488_s15 + $0x108] sm:$0xff]  ;;  %v642_v35 = vld [vmem:[%s488_s15 + $0x110] sm:$0xff]  ;;  %v645_v36 = vld [vmem:[%s488_s15 + $0x118] sm:$0xff] }
  0x25   : > { %v648_v37 = vld [vmem:[%s488_s15 + $0x120] sm:$0xff]  ;;  %v651_v38 = vld [vmem:[%s488_s15 + $0x128] sm:$0xff]  ;;  %v654_v39 = vld [vmem:[%s488_s15 + $0x130] sm:$0xff] }
  0x26   : > { %v657_v40 = vld [vmem:[%s488_s15 + $0x138] sm:$0xff]  ;;  %v660_v41 = vld [vmem:[%s488_s15 + $0x140] sm:$0xff]  ;;  %v663_v42 = vld [vmem:[%s488_s15 + $0x148] sm:$0xff] }
  0x27   : > { %v666_v43 = vld [vmem:[%s488_s15 + $0x150] sm:$0xff]  ;;  %v669_v44 = vld [vmem:[%s488_s15 + $0x158] sm:$0xff]  ;;  %v672_v45 = vld [vmem:[%s488_s15 + $0x160] sm:$0xff] }
  0x28   : > { %v675_v46 = vld [vmem:[%s488_s15 + $0x168] sm:$0xff]  ;;  %v678_v47 = vld [vmem:[%s488_s15 + $0x170] sm:$0xff]  ;;  %v681_v48 = vld [vmem:[%s488_s15 + $0x178] sm:$0xff] }
  0x29   : > { %v684_v49 = vld [vmem:[%s488_s15 + $0x180] sm:$0xff]  ;;  %v687_v50 = vld [vmem:[%s488_s15 + $0x188] sm:$0xff]  ;;  %v690_v51 = vld [vmem:[%s488_s15 + $0x190] sm:$0xff]  ;;  %332 = sbr.rel (%p331_p5) target bundleno = 331 (0x14b), region = 61 }
  0x2a   : > { %v693_v52 = vld [vmem:[%s488_s15 + $0x198] sm:$0xff]  ;;  %v696_v53 = vld [vmem:[%s488_s15 + $0x1a0] sm:$0xff]  ;;  %v699_v54 = vld [vmem:[%s488_s15 + $0x1a8] sm:$0xff] }
  0x2b   : > { %v702_v55 = vld [vmem:[%s488_s15 + $0x1b0] sm:$0xff]  ;;  %v705_v56 = vld [vmem:[%s488_s15 + $0x1b8] sm:$0xff]  ;;  %v708_v57 = vld [vmem:[%s488_s15 + $0x1c0] sm:$0xff] }
  0x2c   : > { %v711_v58 = vld [vmem:[%s488_s15 + $0x1c8] sm:$0xff]  ;;  %v714_v59 = vld [vmem:[%s488_s15 + $0x1d0] sm:$0xff]  ;;  %v717_v60 = vld [vmem:[%s488_s15 + $0x1d8] sm:$0xff] }
  0x2d   : > { %831 = vst [vmem:[#allocation9_spill] sm:$0xff] %v714_v59  ;;  %v720_v61 = vld [vmem:[%s488_s15 + $0x1e0] sm:$0xff]  ;;  %v723_v62 = vld [vmem:[%s488_s15 + $0x1e8] sm:$0xff]  ;;  %v726_v63 = vld [vmem:[%s488_s15 + $0x1f0] sm:$0xff] }
  0x2e   : > { %832 = vst [vmem:[#allocation10_spill] sm:$0xff] %v720_v61  ;;  %833 = vst [vmem:[#allocation11_spill] sm:$0xff] %v723_v62  ;;  %v729_v0 = vld [vmem:[%s488_s15 + $0x1f8] sm:$0xff] }
  0x2f   : > { %834 = vst [vmem:[#allocation12_spill] sm:$0xff] %v726_v63  ;;  %835 = vst [vmem:[#allocation13_spill] sm:$0xff] %v729_v0 }
  0x30 LB: >> { %v837_v2 = vld [vmem:[#allocation3_spill] sm:$0xff]  ;;  %v838_v4 = vld [vmem:[#allocation5_spill] sm:$0xff]  ;;  %v839_v1 = vld [vmem:[#allocation2_spill] sm:$0xff]  ;;  %s219_s15 = ssub.s32 %s455_s23, %s479_s10  ;;  %v368_v59 = vpack.c.bf16 %v573_v12, %v567_v10  ;;  %s354_s30 = sshll.u32 %s455_s23, 8  ;;  %s455_s23 = sphi %s836_s23, %s216_s23  }
  0x31   : >> { %v360_v61 = vpack.c.bf16 %v838_v4, %v837_v2  ;;  %v840_v3 = vld [vmem:[#allocation4_spill] sm:$0xff]  ;;  %v841_v6 = vld [vmem:[#allocation7_spill] sm:$0xff]  ;;  %v842_v5 = vld [vmem:[#allocation6_spill] sm:$0xff]  ;;  %s353_s24 = sshll.u32 %s219_s15, 8  ;;  %v376_v2 = vpack.c.bf16 %v597_v20, %v591_v18  ;;  %s228_s3 = sshra.s32 %s354_s30, 7 }
  0x32   : >> { %v362_v63 = vpack.c.bf16 %v840_v3, %v839_v1  ;;  %v364_v0 = vpack.c.bf16 %v561_v8, %v841_v6  ;;  %v843_v7 = vld [vmem:[#allocation8_spill] sm:$0xff]  ;;  %s222_s25 = sshra.s32 %s353_s24, 7  ;;  %v374_v1 = vpack.c.bf16 %v582_v15, %v576_v13  ;;  %s356_s4 = sshll.u32 %s228_s3, 3 }
  0x33   : >> { %361 = vmatprep.subr.bf16.mxu0 %v360_v61  ;;  %v366_v62 = vpack.c.bf16 %v843_v7, %v842_v5  ;;  %s355_s26 = sshll.u32 %s222_s25, 3  ;;  %v370_v61 = vpack.c.bf16 %v570_v11, %v564_v9  ;;  %s231_s7 = scalar_lea.vmem %s823_s2, %s356_s4 }
  0x34   : >> { %363 = vmatpush1.bf16.msra.mxu0 %v362_v63  ;;  %s753_s29 = scalar_lea.vmem %s821_s0, %s355_s26  ;;  %s216_s23 = sadd.s32 1, %s455_s23  }
  0x35   : >> { %365 = vmatprep.subr.bf16.mxu0 %v364_v0  ;;  %v227_v63 = vld [vmem:[%s753_s29 + $0x8] sm:$0xff]  ;;  %v372_v0 = vpack.c.bf16 %v585_v16, %v579_v14  ;;  %v847_v5 = vld [vmem:[#allocation10_spill] sm:$0xff]  ;;  %p215_p6 = scmp.ge.s32.totalorder %s216_s23, 8 }
  0x36   : >> { %298 = vmatprep.mubr.f32.mxu0 %v227_v63  ;;  %v382_v63 = vpack.c.bf16 %v606_v23, %v600_v21  ;;  %v845_v3 = vld [vmem:[#allocation11_spill] sm:$0xff]  ;;  %v846_v4 = vld [vmem:[#allocation13_spill] sm:$0xff]  ;;  %v848_v6 = vld [vmem:[#allocation12_spill] sm:$0xff] }
  0x37   : >> { %v422_v7 = vpack.c.bf16 %v848_v6, %v847_v5 }
  0x38   : >> { %367 = vmatpush1.bf16.msra.mxu0 %v366_v62  ;;  %v378_v62 = vpack.c.bf16 %v594_v19, %v588_v17 }
  0x39   : >> { %369 = vmatprep.subr.bf16.mxu0 %v368_v59  ;;  %v380_v59 = vpack.c.bf16 %v609_v24, %v603_v22 }
  0x3c   : >> { %371 = vmatpush1.bf16.msra.mxu0 %v370_v61  ;;  %v384_v61 = vpack.c.bf16 %v621_v28, %v615_v26 }
  0x3d   : >> { %373 = vmatprep.subr.bf16.mxu0 %v372_v0  ;;  %v386_v0 = vpack.c.bf16 %v618_v27, %v612_v25 }
  0x40   : >> { %375 = vmatpush1.bf16.msra.mxu0 %v374_v1  ;;  %v388_v1 = vpack.c.bf16 %v633_v32, %v627_v30 }
  0x41   : >> { %377 = vmatprep.subr.bf16.mxu0 %v376_v2  ;;  %v390_v2 = vpack.c.bf16 %v630_v31, %v624_v29 }
  0x44   : >> { %379 = vmatpush1.bf16.msra.mxu0 %v378_v62  ;;  %v392_v62 = vpack.c.bf16 %v645_v36, %v639_v34 }
  0x45   : >> { %381 = vmatprep.subr.bf16.mxu0 %v380_v59  ;;  %v394_v59 = vpack.c.bf16 %v642_v35, %v636_v33 }
  0x48   : >> { %383 = vmatpush1.bf16.msra.mxu0 %v382_v63  ;;  %v396_v63 = vpack.c.bf16 %v657_v40, %v651_v38 }
  0x49   : >> { %385 = vmatprep.subr.bf16.mxu0 %v384_v61  ;;  %v398_v61 = vpack.c.bf16 %v654_v39, %v648_v37 }
  0x4c   : >> { %387 = vmatpush1.bf16.msra.mxu0 %v386_v0  ;;  %v400_v0 = vpack.c.bf16 %v669_v44, %v663_v42 }
  0x4d   : >> { %389 = vmatprep.subr.bf16.mxu0 %v388_v1  ;;  %v402_v1 = vpack.c.bf16 %v666_v43, %v660_v41 }
  0x50   : >> { %391 = vmatpush1.bf16.msra.mxu0 %v390_v2  ;;  %v404_v2 = vpack.c.bf16 %v681_v48, %v675_v46 }
  0x51   : >> { %393 = vmatprep.subr.bf16.mxu0 %v392_v62  ;;  %v406_v62 = vpack.c.bf16 %v678_v47, %v672_v45 }
  0x54   : >> { %395 = vmatpush1.bf16.msra.mxu0 %v394_v59  ;;  %v408_v59 = vpack.c.bf16 %v693_v52, %v687_v50 }
  0x55   : >> { %397 = vmatprep.subr.bf16.mxu0 %v396_v63  ;;  %v410_v63 = vpack.c.bf16 %v690_v51, %v684_v49 }
  0x58   : >> { %399 = vmatpush1.bf16.msra.mxu0 %v398_v61  ;;  %v412_v61 = vpack.c.bf16 %v705_v56, %v699_v54 }
  0x59   : >> { %401 = vmatprep.subr.bf16.mxu0 %v400_v0  ;;  %v414_v0 = vpack.c.bf16 %v702_v55, %v696_v53 }
  0x5c   : >> { %403 = vmatpush1.bf16.msra.mxu0 %v402_v1  ;;  %v416_v1 = vpack.c.bf16 %v717_v60, %v711_v58 }
  0x5d   : >> { %405 = vmatprep.subr.bf16.mxu0 %v404_v2  ;;  %v844_v2 = vld [vmem:[#allocation9_spill] sm:$0xff] }
  0x60   : >> { %407 = vmatpush1.bf16.msra.mxu0 %v406_v62  ;;  %v418_v62 = vpack.c.bf16 %v844_v2, %v708_v57 }
  0x61   : >> { %409 = vmatprep.subr.bf16.mxu0 %v408_v59  ;;  %v420_v59 = vpack.c.bf16 %v846_v4, %v845_v3 }
  0x64   : >> { %411 = vmatpush1.bf16.msra.mxu0 %v410_v63  ;;  %v226_v63 = vld [vmem:[%s753_s29] sm:$0xff] }
  0x65   : >> { %413 = vmatprep.subr.bf16.mxu0 %v412_v61  ;;  %v232_v61 = vld [vmem:[%s231_s7] sm:$0xff] }
  0x68   : >> { %415 = vmatpush1.bf16.msra.mxu0 %v414_v0  ;;  %v233_v0 = vld [vmem:[%s231_s7 + $0x8] sm:$0xff] }
  0x69   : >> { %417 = vmatprep.subr.bf16.mxu0 %v416_v1 }
  0x6c   : >> { %419 = vmatpush1.bf16.msra.mxu0 %v418_v62 }
  0x6d   : >> { %421 = vmatprep.subr.bf16.mxu0 %v420_v59 }
  0x70   : >> { %423 = vmatpush1.bf16.msra.mxu0 %v422_v7 }
  0x73   : >> { %299 = vmatmul.mubr.f32.vlgmr.msra.gmra.mrb[0].mxu0 %v226_v63 }
 0x144   : > { %218 = sbr.rel (!%p215_p6) target bundleno = 48 (0x30), region = 67 }
 0x146   : >> { %v300_v1 = vpop.f32.mrb[0].mxu0 }
 0x147   : >> { %v305_v2 = vadd.f32 %v300_v1, %v232_v61  ;;  %v302_v3 = vpop.f32.mrb[1].mxu0 }
 0x148   : >> { %v306_v4 = vadd.f32 %v302_v3, %v233_v0 }
 0x149   : >> { %307 = vst [vmem:[%s231_s7] sm:$0xff] %v305_v2 }
 0x14a   : >> { %308 = vst [vmem:[%s231_s7 + $0x8] sm:$0xff] %v306_v4 }
 0x14b PF: > { %s12_s9 = sadd.s32 1, %s451_s9  }
 0x14c   : > { %p9_p7 = scmp.ge.s32.totalorder %s12_s9, 6  }
 0x14e   :  { %11 = sbr.rel (!%p9_p7) target bundleno = 1 (0x1), region = 78 }

</bundles_post_ra>
